<compile_context>
chip_gen: v7x
topology: tpu7x:2x2x1
jax: 0.10.0
libtpu: 0.0.40
codegen_flags: <defaults>
</compile_context>

<pallas_src>
import functools

import jax
import jax.numpy as jnp
from jax.experimental import pallas as pl
from jax.experimental.pallas import tpu as pltpu


def _round_up(x, m):
    return (x + m - 1) // m * m


def _make_qfunc_kernel(n_layers):
    """Kernel for an MLP with (n_layers - 1) ReLU hidden layers + 1-wide Tanh head."""

    def kernel(x_ref, *refs):
        param_refs = refs[:-1]     # w0, b0, w1, b1, ..., w_last(col), b_last
        out_ref = refs[-1]

        # Activations are (features, BM): batch on lanes, features on sublanes.
        h = x_ref[...]
        for l in range(n_layers - 1):
            w = param_refs[2 * l][...]          # (H_out, H_in)
            b = param_refs[2 * l + 1][...]      # (H_out, 1)
            h = jnp.dot(w, h, preferred_element_type=jnp.float32) + b
            h = jnp.maximum(h, 0.0)

        # Output layer (out_features == 1): VPU multiply + sublane reduction
        # instead of a 1-row MXU matmul; result is the lane-dense (1, BM) row.
        w_last = param_refs[-2][...]            # (H_last, 1)
        b_last = param_refs[-1][...]            # (1, 1)
        q = jnp.sum(h * w_last, axis=0, keepdims=True) + b_last
        out_ref[...] = jnp.tanh(q)

    return kernel


@functools.partial(jax.jit, static_argnames=("block_batch",))
def mlp_q_function(obs, act, params, *, block_batch=8192):
    """Pallas forward of MLPQFunction: returns q(obs, act) with shape (B,)."""
    params = list(params)
    assert len(params) >= 2 and len(params) % 2 == 0, "params = (w, b) per layer"
    n_layers = len(params) // 2

    obs = jnp.asarray(obs, jnp.float32)
    act = jnp.asarray(act, jnp.float32)
    B, obs_dim = obs.shape
    act_dim = act.shape[1]
    in_dim = obs_dim + act_dim

    # concat + transpose fused in the wrapper: kernel sees lane-dense (in_dim, B).
    x_t = jnp.concatenate([obs, act], axis=-1).T            # (in_dim, B)

    # Reshape params once (PyTorch nn.Linear layout: W (out, in), b (out,)).
    prepped = []
    for l in range(n_layers - 1):
        w, b = params[2 * l], params[2 * l + 1]
        prepped.append(jnp.asarray(w, jnp.float32))                  # (H_out, H_in)
        prepped.append(jnp.asarray(b, jnp.float32).reshape(-1, 1))   # (H_out, 1)
    w_last, b_last = params[-2], params[-1]
    prepped.append(jnp.asarray(w_last, jnp.float32).reshape(-1, 1))  # (H_last, 1)
    prepped.append(jnp.asarray(b_last, jnp.float32).reshape(1, 1))   # (1, 1)

    # --- batch tile choice ---------------------------------------------------
    # Large lane-aligned tiles (step-overhead amortization); >= 2 grid steps for
    # moderate/large batches so both v7x TensorCores get work; NO full-batch pad
    # (partial last tile handled by Pallas out-of-bounds masking).
    block_batch = max(128, _round_up(block_batch, 128))
    if B <= block_batch:
        if B > 256:
            bm = _round_up(pl.cdiv(B, 2), 128)   # >= 2 tiles, 128-aligned
        else:
            bm = B                               # one tile == full batch
    else:
        bm = block_batch
    grid = (pl.cdiv(B, bm),)

    const2d = lambda a: pl.BlockSpec(a.shape, lambda i: (0, 0))  # VMEM-resident params

    in_specs = [pl.BlockSpec((in_dim, bm), lambda i: (0, i))]    # lane-dense x^T tile
    in_specs += [const2d(p) for p in prepped]

    out = pl.pallas_call(
        _make_qfunc_kernel(n_layers),
        out_shape=jax.ShapeDtypeStruct((1, B), jnp.float32),
        grid=grid,
        in_specs=in_specs,
        out_specs=pl.BlockSpec((1, bm), lambda i: (0, i)),       # lane-dense output row
        compiler_params=pltpu.CompilerParams(
            dimension_semantics=("parallel",)),                  # shards tiles across TCs on v7x
    )(x_t, *prepped)

    return out[0]                                # == torch.squeeze(q, -1)


def init_params(key, obs_dim, act_dim, hidden_sizes):
    """nn.Linear-style init (uniform +/- 1/sqrt(fan_in)); PyTorch (out, in) layout."""
    sizes = [obs_dim + act_dim] + list(hidden_sizes) + [1]
    params = []
    for j in range(len(sizes) - 1):
        key, kw, kb = jax.random.split(key, 3)
        fan_in = sizes[j]
        bound = 1.0 / jnp.sqrt(jnp.float32(fan_in))
        w = jax.random.uniform(kw, (sizes[j + 1], sizes[j]), jnp.float32, -bound, bound)
        b = jax.random.uniform(kb, (sizes[j + 1],), jnp.float32, -bound, bound)
        params += [w, b]
    return tuple(params)


def _reference(obs, act, params):
    """Pure-JAX reference (mirrors the PyTorch module) for correctness check."""
    x = jnp.concatenate([obs, act], axis=-1).astype(jnp.float32)
    n_layers = len(params) // 2
    h = x
    for l in range(n_layers - 1):
        h = jnp.maximum(h @ params[2 * l].T + params[2 * l + 1], 0.0)
    q = jnp.tanh(h @ params[-2].T + params[-1])
    return jnp.squeeze(q, -1)


if __name__ == "__main__":
    key = jax.random.PRNGKey(0)
    obs_dim, act_dim = 11, 3
    hidden_sizes = (32, 32)

    k_obs, k_act, k_params, k_obs2, k_act2 = jax.random.split(key, 5)
    params = init_params(k_params, obs_dim, act_dim, hidden_sizes)

    # Small, non-8-aligned batch: single full tile path.
    batch = 10
    obs = jax.random.normal(k_obs, (batch, obs_dim), jnp.float32)
    act = jax.random.normal(k_act, (batch, act_dim), jnp.float32)
    q = jax.block_until_ready(mlp_q_function(obs, act, params))
    q_ref = _reference(obs, act, params)
    assert q.shape == (batch,), q.shape
    assert jnp.allclose(q, q_ref, atol=1e-5, rtol=1e-5), (q, q_ref)

    # Moderate batch: exercises the 2-tile grid with a partial (masked) last tile.
    batch2 = 300
    obs2 = jax.random.normal(k_obs2, (batch2, obs_dim), jnp.float32)
    act2 = jax.random.normal(k_act2, (batch2, act_dim), jnp.float32)
    q2 = jax.block_until_ready(mlp_q_function(obs2, act2, params))
    q2_ref = _reference(obs2, act2, params)
    assert q2.shape == (batch2,), q2.shape
    assert jnp.allclose(q2, q2_ref, atol=1e-5, rtol=1e-5), (q2, q2_ref)

    print("KERNEL_OK")
</pallas_src>

<mosaic_0001>
module attributes {stable_mosaic.version = 11 : i64} {
  func.func @kernel(%arg0: i32, %arg1: memref<14x10xf32, #tpu.memory_space<vmem>>, %arg2: memref<32x14xf32, #tpu.memory_space<vmem>>, %arg3: memref<32x1xf32, #tpu.memory_space<vmem>>, %arg4: memref<32x32xf32, #tpu.memory_space<vmem>>, %arg5: memref<32x1xf32, #tpu.memory_space<vmem>>, %arg6: memref<32x1xf32, #tpu.memory_space<vmem>>, %arg7: memref<1x1xf32, #tpu.memory_space<vmem>>, %arg8: memref<1x10xf32, #tpu.memory_space<vmem>>) attributes {dimension_semantics = [#tpu.dimension_semantics<parallel>], iteration_bounds = array<i64: 1>, scalar_prefetch = 0 : i64, scratch_operands = 0 : i64, tpu.core_type = #tpu.core_type<tc>, window_params = [{transform_indices = @transform_0, window_bounds = array<i64: 14, 10>}, {pipeline_mode = #tpu.pipeline_mode<synchronous>, transform_indices = @transform_1, window_bounds = array<i64: 32, 14>}, {pipeline_mode = #tpu.pipeline_mode<synchronous>, transform_indices = @transform_2, window_bounds = array<i64: 32, 1>}, {pipeline_mode = #tpu.pipeline_mode<synchronous>, transform_indices = @transform_3, window_bounds = array<i64: 32, 32>}, {pipeline_mode = #tpu.pipeline_mode<synchronous>, transform_indices = @transform_4, window_bounds = array<i64: 32, 1>}, {pipeline_mode = #tpu.pipeline_mode<synchronous>, transform_indices = @transform_5, window_bounds = array<i64: 32, 1>}, {pipeline_mode = #tpu.pipeline_mode<synchronous>, transform_indices = @transform_6, window_bounds = array<i64: 1, 1>}, {transform_indices = @transform_7, window_bounds = array<i64: 1, 10>}]} {
    %c0 = arith.constant 0 : index
    %c0_0 = arith.constant 0 : index
    %0 = vector.load %arg1[%c0, %c0_0] : memref<14x10xf32, #tpu.memory_space<vmem>>, vector<14x10xf32>
    %c0_1 = arith.constant 0 : index
    %c0_2 = arith.constant 0 : index
    %1 = vector.load %arg2[%c0_1, %c0_2] : memref<32x14xf32, #tpu.memory_space<vmem>>, vector<32x14xf32>
    %c0_3 = arith.constant 0 : index
    %c0_4 = arith.constant 0 : index
    %2 = vector.load %arg3[%c0_3, %c0_4] : memref<32x1xf32, #tpu.memory_space<vmem>>, vector<32x1xf32>
    %cst = arith.constant dense<0.000000e+00> : vector<32x10xf32>
    %3 = tpu.matmul %1, %0, %cst {dimension_numbers = #tpu.dot_dimension_numbers<[1], [0], [0], [1], [0, 0, 1, 1], [], []>} : vector<32x14xf32>, vector<14x10xf32>, vector<32x10xf32> -> vector<32x10xf32>
    %4 = vector.broadcast %2 : vector<32x1xf32> to vector<32x10xf32>
    %5 = arith.addf %3, %4 : vector<32x10xf32>
    %cst_5 = arith.constant 0.000000e+00 : f32
    %6 = vector.broadcast %cst_5 : f32 to vector<32x10xf32>
    %7 = arith.maximumf %5, %6 : vector<32x10xf32>
    %c0_6 = arith.constant 0 : index
    %c0_7 = arith.constant 0 : index
    %8 = vector.load %arg4[%c0_6, %c0_7] : memref<32x32xf32, #tpu.memory_space<vmem>>, vector<32x32xf32>
    %c0_8 = arith.constant 0 : index
    %c0_9 = arith.constant 0 : index
    %9 = vector.load %arg5[%c0_8, %c0_9] : memref<32x1xf32, #tpu.memory_space<vmem>>, vector<32x1xf32>
    %cst_10 = arith.constant dense<0.000000e+00> : vector<32x10xf32>
    %10 = tpu.matmul %8, %7, %cst_10 {dimension_numbers = #tpu.dot_dimension_numbers<[1], [0], [0], [1], [0, 0, 1, 1], [], []>} : vector<32x32xf32>, vector<32x10xf32>, vector<32x10xf32> -> vector<32x10xf32>
    %11 = vector.broadcast %9 : vector<32x1xf32> to vector<32x10xf32>
    %12 = arith.addf %10, %11 : vector<32x10xf32>
    %cst_11 = arith.constant 0.000000e+00 : f32
    %13 = vector.broadcast %cst_11 : f32 to vector<32x10xf32>
    %14 = arith.maximumf %12, %13 : vector<32x10xf32>
    %c0_12 = arith.constant 0 : index
    %c0_13 = arith.constant 0 : index
    %15 = vector.load %arg6[%c0_12, %c0_13] : memref<32x1xf32, #tpu.memory_space<vmem>>, vector<32x1xf32>
    %c0_14 = arith.constant 0 : index
    %c0_15 = arith.constant 0 : index
    %16 = vector.load %arg7[%c0_14, %c0_15] : memref<1x1xf32, #tpu.memory_space<vmem>>, vector<1x1xf32>
    %17 = vector.broadcast %15 : vector<32x1xf32> to vector<32x10xf32>
    %18 = arith.mulf %14, %17 : vector<32x10xf32>
    %cst_16 = arith.constant dense<0.000000e+00> : vector<10xf32>
    %19 = vector.multi_reduction <add>, %18, %cst_16 [0] : vector<32x10xf32> to vector<10xf32>
    %20 = vector.shape_cast %19 : vector<10xf32> to vector<1x10xf32>
    %21 = vector.broadcast %16 : vector<1x1xf32> to vector<1x10xf32>
    %22 = arith.addf %20, %21 : vector<1x10xf32>
    %23 = math.tanh %22 : vector<1x10xf32>
    %c0_17 = arith.constant 0 : index
    %c0_18 = arith.constant 0 : index
    %24 = vector.load %arg8[%c0_17, %c0_18] : memref<1x10xf32, #tpu.memory_space<vmem>>, vector<1x10xf32>
    tpu.vector_store %arg8[%c0_17, %c0_18], %23 {strides = array<i32>} : memref<1x10xf32, #tpu.memory_space<vmem>>, vector<1x10xf32>,
    return
  }
  func.func @transform_0(%arg0: i32) -> (i32, i32) {
    %c0_i32 = arith.constant 0 : i32
    %c0_i32_0 = arith.constant 0 : i32
    return %c0_i32, %arg0 : i32, i32
  }
  func.func @transform_1(%arg0: i32) -> (i32, i32) {
    %c0_i32 = arith.constant 0 : i32
    %c0_i32_0 = arith.constant 0 : i32
    %c0_i32_1 = arith.constant 0 : i32
    return %c0_i32, %c0_i32_0 : i32, i32
  }
  func.func @transform_2(%arg0: i32) -> (i32, i32) {
    %c0_i32 = arith.constant 0 : i32
    %c0_i32_0 = arith.constant 0 : i32
    %c0_i32_1 = arith.constant 0 : i32
    return %c0_i32, %c0_i32_0 : i32, i32
  }
  func.func @transform_3(%arg0: i32) -> (i32, i32) {
    %c0_i32 = arith.constant 0 : i32
    %c0_i32_0 = arith.constant 0 : i32
    %c0_i32_1 = arith.constant 0 : i32
    return %c0_i32, %c0_i32_0 : i32, i32
  }
  func.func @transform_4(%arg0: i32) -> (i32, i32) {
    %c0_i32 = arith.constant 0 : i32
    %c0_i32_0 = arith.constant 0 : i32
    %c0_i32_1 = arith.constant 0 : i32
    return %c0_i32, %c0_i32_0 : i32, i32
  }
  func.func @transform_5(%arg0: i32) -> (i32, i32) {
    %c0_i32 = arith.constant 0 : i32
    %c0_i32_0 = arith.constant 0 : i32
    %c0_i32_1 = arith.constant 0 : i32
    return %c0_i32, %c0_i32_0 : i32, i32
  }
  func.func @transform_6(%arg0: i32) -> (i32, i32) {
    %c0_i32 = arith.constant 0 : i32
    %c0_i32_0 = arith.constant 0 : i32
    %c0_i32_1 = arith.constant 0 : i32
    return %c0_i32, %c0_i32_0 : i32, i32
  }
  func.func @transform_7(%arg0: i32) -> (i32, i32) {
    %c0_i32 = arith.constant 0 : i32
    %c0_i32_0 = arith.constant 0 : i32
    return %c0_i32, %arg0 : i32, i32
  }
}

</mosaic_0001>

<bundles_post_ra>
// kernel: mlp_q_function.1
= control target key start
LH: loop header
LB: loop body
LE: loop exit
PB: predicated region body
PF: predicated region fallthrough
CT: control target
= control target key end

     0   :  { %s593_s0 = inlined_call_operand.vmem [shape: f32[14,10], index: 0, kind: input, shape index: {}]   ;;  %s594_s1 = inlined_call_operand.vmem [shape: f32[32,14], index: 1, kind: input, shape index: {}]   ;;  %s595_s2 = inlined_call_operand.vmem [shape: f32[32,1], index: 2, kind: input, shape index: {}]   ;;  %s596_s3 = inlined_call_operand.vmem [shape: f32[32,32], index: 3, kind: input, shape index: {}]   ;;  %s597_s4 = inlined_call_operand.vmem [shape: f32[32,1], index: 4, kind: input, shape index: {}]   ;;  %s598_s5 = inlined_call_operand.vmem [shape: f32[32,1], index: 5, kind: input, shape index: {}]   ;;  %s599_s6 = inlined_call_operand.<no memory space> [shape: f32[1,1], index: 6, kind: input, shape index: {}]   ;;  %s600_s7 = inlined_call_operand.hbm [shape: f32[1,10], index: 7, kind: output, shape index: {}]  }
   0x1   :  { %v12_v0 = vstv %s599_s6 }
   0x2   :  { %13 = vst [vmem:[#allocation2] sm:$0x1] %v12_v0 }
   0x3   :  { %v29_v1 = vld [vmem:[%s593_s0] sm:$0xff]  ;;  %v30_v2 = vld [vmem:[%s593_s0 + $0x8] sm:$0x3f]  ;;  %vm72_vm0 = vcmask 1045504   ;;  %vm457_vm1 = vmmov 1   ;;  %vm59_vm3 = vcmask 113664  }
   0x4   :  { %v31_v3 = vld [vmem:[%s594_s1] sm:$0xff]  ;;  %v412_v4 = vpack.c.bf16 %v30_v2, %v29_v1  ;;  %vm413_vm2 = vmpackc.low %vm72_vm0, %vm457_vm1  ;;  %v458_v5 = vmov 0   ;;  %v37_v7 = vld [vmem:[%s595_s2 + $0x10] sm:$0xff] }
   0x5   :  { %392 = vmatprep.mubr.msk.f32.mxu0 %vm59_vm3, %v31_v3  ;;  %429 = vset.pattern.permute.xlu0 %v458_v5  ;;  %v35_v6 = vld [vmem:[%s595_s2] sm:$0xff]  ;;  %v32_v8 = vld [vmem:[%s594_s1 + $0x8] sm:$0xff]  ;;  %v33_v10 = vld [vmem:[%s594_s1 + $0x10] sm:$0xff] }
   0x6   :  { %414 = vmatprep.subr.msk.bf16.mxu0 %vm413_vm2, %v412_v4  ;;  %41 = vperm.xlu0 %429, %v35_v6   ;;  %v36_v9 = vld [vmem:[%s595_s2 + $0x8] sm:$0xff]  ;;  %v38_v11 = vld [vmem:[%s595_s2 + $0x18] sm:$0xff] }
   0x7   :  { %417 = vmatpush3.bf16.msk.msra.mxu0 %vm413_vm2, %v412_v4  ;;  %430 = vset.pattern.permute.xlu1 %v458_v5 }
   0x8   :  { %51 = vperm.xlu1 %430, %v37_v7  }
   0x9   :  { %14 = vsyncpa [#allocation4], 0  ;;  %v34_v12 = vld [vmem:[%s594_s1 + $0x18] sm:$0xff]  ;;  %v169_v13 = vld [vmem:[%s597_s4] sm:$0xff]  ;;  %vm193_vm4 = vcmask 261120   ;;  %vm324_vm5 = vcmask 80896  }
   0xa   :  { %393 = vmatmul.mubr.msk.f32.vlgmr.msra.gmra.mrb[0].mxu0 %vm59_vm3, %v32_v8  ;;  %46 = vperm.xlu0 %429, %v36_v9   ;;  %v170_v14 = vld [vmem:[%s597_s4 + $0x8] sm:$0xff]  ;;  %v171_v15 = vld [vmem:[%s597_s4 + $0x10] sm:$0xff]  ;;  %v172_v16 = vld [vmem:[%s597_s4 + $0x18] sm:$0xff]  ;;  %vm349_vm6 = vcmask 73728  }
   0xb   :  { %395 = vmatprep.mubr.msk.f32.mxu0 %vm59_vm3, %v33_v10  ;;  %v295_v17 = vld [vmem:[%s598_s5] sm:$0xff]  ;;  %v296_v18 = vld [vmem:[%s598_s5 + $0x8] sm:$0xff]  ;;  %v297_v19 = vld [vmem:[%s598_s5 + $0x10] sm:$0xff]  ;;  %v343_v10 = vlaneseq }
   0xc   :  { %56 = vperm.xlu1 %430, %v38_v11   ;;  %v298_v20 = vld [vmem:[%s598_s5 + $0x18] sm:$0xff]  ;;  %v299_v21 = vld [vmem:[#allocation2] sm:$0x1]  ;;  %v166_v41 = vld [vmem:[%s596_s3 + $0x8] sm:$0xff] }
   0xd   :  { %v165_v22 = vld [vmem:[%s596_s3] sm:$0xff]  ;;  %v167_v42 = vld [vmem:[%s596_s3 + $0x10] sm:$0xff]  ;;  %v168_v43 = vld [vmem:[%s596_s3 + $0x18] sm:$0xff]  ;;  %s459_s3 = smov [#allocation3]  }
   0xe   :  { %396 = vmatmul.mubr.msk.f32.gmra.mrb[2].mxu0 %vm59_vm3, %v34_v12  ;;  %175 = vperm.xlu0 %429, %v169_v13   ;;  %v344_v13 = vshrl.u32 %v343_v10, 7  ;;  %s357_s16 = sshll.u32 %s459_s3, 4  ;;  %s358_s16 = int_to_ptr.vmem [resolvable:$true] %s357_s16 }
   0xf   :  { %406 = vmatprep.mubr.msk.f32.mxu1 %vm193_vm4, %v165_v22  ;;  %s433_s17 = scalar_lea.vmem %s358_s16, 16  ;;  %s437_s18 = scalar_lea.vmem %s358_s16, 32 }
  0x10   :  { %180 = vperm.xlu1 %430, %v170_v14   ;;  %p434_p0 = scmp.ne.s32.totalorder %s358_s16, %s433_s17  ;;  %p438_p1 = scmp.lt.s32.totalorder %s358_s16, %s358_s16 }
  0x11   :  { %p439_p2 = scmp.lt.s32.totalorder %s437_s18, %s433_s17 }
  0x12   :  { %185 = vperm.xlu0 %429, %v171_v15  }
  0x13   :  { %p440_p3 = por %p439_p2, %p438_p1 }
  0x14   :  { %190 = vperm.xlu1 %430, %v172_v16   ;;  %v345_v16 = vsub.s32 0, %v344_v13 }
  0x15   :  { %p441_p4 = pnand %p440_p3, %p434_p0 }
  0x16   :  { %302 = vperm.xlu0 %429, %v295_v17  }
  0x18   :  { %307 = vperm.xlu1 %430, %v296_v18  }
  0x1a   :  { %312 = vperm.xlu0 %429, %v297_v19  }
  0x1c   :  { %317 = vperm.xlu1 %430, %v298_v20  }
  0x1e   :  { %340 = vperm.xlu0 %429, %v299_v21  }
  0x85   :  { %v42_v23 = vpop.permute.xlu0 %41 }
  0x87   :  { %v52_v24 = vpop.permute.xlu1 %51 }
  0x89   :  { %v47_v25 = vpop.permute.xlu0 %46 }
  0x8b   :  { %v57_v31 = vpop.permute.xlu1 %56 }
  0x8d   :  { %v176_v44 = vpop.permute.xlu0 %175 }
  0x8f   :  { %v181_v45 = vpop.permute.xlu1 %180 }
  0x91   :  { %v186_v46 = vpop.permute.xlu0 %185 }
  0x93   :  { %v191_v47 = vpop.permute.xlu1 %190 }
  0x95   :  { %v303_v52 = vpop.permute.xlu0 %302 }
  0x97   :  { %v308_v53 = vpop.permute.xlu1 %307 }
  0x99   :  { %v313_v2 = vpop.permute.xlu0 %312 }
  0x9b   :  { %v318_v3 = vpop.permute.xlu1 %317 }
  0x9d   :  { %v341_v18 = vpop.permute.xlu0 %340 }
  0x9e   :  { %v346_v20 = vrot.slane %v341_v18, %v345_v16 }
  0xdd   :  { %v394_v26 = vpop.f32.mrb[0].mxu0 }
  0xde   :  { %v148_v27 = vadd.f32 %v394_v26, %v47_v25  ;;  %v142_v28 = vpop.f32.mrb[1].mxu0 }
  0xdf   :  { %v143_v29 = vadd.f32 %v142_v28, %v42_v23 }
  0xe0   :  { %v162_v30 = vmax.f32 %v148_v27, 0.0 }
  0xe1   :  { %v161_v32 = vmax.f32 %v143_v29, 0.0  ;;  %v397_v33 = vpop.f32.mrb[2].mxu0 }
  0xe2   :  { %v158_v34 = vadd.f32 %v397_v33, %v57_v31  ;;  %v152_v35 = vpop.f32.mrb[3].mxu0 }
  0xe3   :  { %v153_v36 = vadd.f32 %v152_v35, %v52_v24  ;;  %v418_v37 = vpack.c.bf16 %v162_v30, %v161_v32 }
  0xe4   :  { %v164_v38 = vmax.f32 %v158_v34, 0.0 }
  0xe5   :  { %v163_v39 = vmax.f32 %v153_v36, 0.0  ;;  %419 = vmatprep.subr.bf16.mxu1 %v418_v37 }
  0xe6   :  { %421 = vmatpush3.bf16.msra.mxu1 %v418_v37 }
  0xe7   :  { %v422_v40 = vpack.c.bf16 %v164_v38, %v163_v39 }
  0xe9   :  { %423 = vmatprep.subr.bf16.mxu1 %v422_v40 }
  0xea   :  { %425 = vmatpush3.bf16.msra.mxu1 %v422_v40 }
  0xed   :  { %407 = vmatmul.mubr.msk.f32.vlgmr.msra.gmra.mrb[0].mxu1 %vm193_vm4, %v166_v41 }
  0xee   :  { %409 = vmatprep.mubr.msk.f32.mxu1 %vm193_vm4, %v167_v42 }
  0xf1   :  { %410 = vmatmul.mubr.msk.f32.gmra.mrb[2].mxu1 %vm193_vm4, %v168_v43 }
 0x1c0   :  { %v408_v48 = vpop.f32.mrb[0].mxu1 }
 0x1c1   :  { %v278_v49 = vadd.f32 %v408_v48, %v181_v45  ;;  %v272_v50 = vpop.f32.mrb[1].mxu1 }
 0x1c2   :  { %v273_v51 = vadd.f32 %v272_v50, %v176_v44 }
 0x1c3   :  { %v292_v54 = vmax.f32 %v278_v49, 0.0 }
 0x1c4   :  { %v291_v55 = vmax.f32 %v273_v51, 0.0  ;;  %v411_v56 = vpop.f32.mrb[2].mxu1 }
 0x1c5   :  { %v321_v57 = vmul.f32 %v308_v53, %v292_v54  ;;  %v288_v58 = vadd.f32 %v411_v56, %v191_v47  ;;  %v282_v59 = vpop.f32.mrb[3].mxu1 }
 0x1c6   :  { %v320_v60 = vmul.f32 %v303_v52, %v291_v55  ;;  %v283_v61 = vadd.f32 %v282_v59, %v186_v46 }
 0x1c7   :  { %v326_v62 = vsel %vm324_vm5, %v321_v57, 0.0  ;;  %v294_v63 = vmax.f32 %v288_v58, 0.0 }
 0x1c8   :  { %v325_v0 = vsel %vm324_vm5, %v320_v60, 0.0  ;;  %v293_v1 = vmax.f32 %v283_v61, 0.0 }
 0x1c9   :  { %v327_v4 = vadd.f32 %v326_v62, %v325_v0  ;;  %v323_v5 = vmul.f32 %v318_v3, %v294_v63 }
 0x1ca   :  { %v322_v6 = vmul.f32 %v313_v2, %v293_v1 }
 0x1cb   :  { %v330_v9 = vsel %vm324_vm5, %v323_v5, 0.0 }
 0x1cc   :  { %v328_v7 = vsel %vm324_vm5, %v322_v6, 0.0 }
 0x1cd   :  { %v329_v8 = vadd.f32 %v328_v7, %v327_v4 }
 0x1cf   :  { %v331_v11 = vadd.f32 %v330_v9, %v329_v8 }
 0x1d1   :  { %v332_v12 = vrot.slane %v331_v11, 4 }
 0x1d3   :  { %v333_v14 = vadd.f32 %v332_v12, %v331_v11 }
 0x1d5   :  { %v334_v15 = vrot.slane %v333_v14, 2 }
 0x1d7   :  { %v335_v17 = vadd.f32 %v334_v15, %v333_v14 }
 0x1d9   :  { %v336_v19 = vrot.slane %v335_v17, 1 }
 0x1db   :  { %v337_v21 = vadd.f32 %v336_v19, %v335_v17 }
 0x1dd   :  { %v347_v22 = vadd.f32 %v346_v20, %v337_v21 }
 0x1df   :  { %431 = vtanh.f32 %v347_v22 }
 0x1e9   :  { %v432_v23 = vpop.eup %431 }
 0x1ea   :  { %350 = vst.msk [vmem:[#allocation3] sm:$0x1] %vm349_vm6, %v432_v23 }
 0x1eb   :  { %444 = shalt.err (!%p441_p4)
}
 0x1ec   :  { %s445_s21 = scalar_lea.hbm %s600_s7, 16 }
 0x1ed   :  { %p446_p5 = scmp.ne.s32.totalorder %s600_s7, %s445_s21  ;;  %p449_p6 = scmp.lt.u32.totalorder %s445_s21, %s600_s7 }
 0x1ef   :  { %p451_p7 = pnand %p449_p6, %p446_p5 }
 0x1f1   :  { %454 = shalt.err (!%p451_p7)
}
 0x1f2   :  { %360 = dma.vmem_to_hbm [thread:$0]  %s358_s16, 16, %s600_s7, [#allocation4]  }
 0x1f3   :  { %455 = dma.done.wait [#allocation4], 16  }
 0x1f4   :  { %456 = vsyncadd [#allocation4], 4294967280 }
 0x1f5   :  { %364 = vsyncpa [#allocation4], 1 }

</bundles_post_ra>
